<compile_context>
chip_gen: v6e
topology: v6e:2x2x1
jax: 0.10.0
libtpu: 0.0.40
codegen_flags: <defaults>
</compile_context>

<pallas_src>
import functools

import jax
import jax.numpy as jnp
from jax.experimental import pallas as pl
from jax.experimental.pallas import tpu as pltpu


# --------------------------------------------------------------------------
# Tiling / layout selection
# --------------------------------------------------------------------------
def _choose_lane_layout(res):
    """Pick (L, k): planar output is viewed as (N, 3, M//L, L), k = L // res.

    L is the lane (minor) dimension of the kernel output block.  We want it to
    be a multiple of 128 (lane-dense stores, full VPU lane usage).
    """
    M = res * res
    if res % 128 == 0:
        return res, 1                       # already lane-dense, plain 2-D grid
    if (res & (res - 1)) == 0 and M % 128 == 0:
        # power-of-2 resolution < 128: pack several image rows per lane-row
        L = 128
        while L * 2 <= min(M, 512):
            L *= 2
        return L, L // res
    # Fallback (rare, odd resolutions): possibly lane-sparse but correct.
    return res, 1


def _choose_tiling(N, R, L, target_bytes=4 << 20):
    """Pick (Bblk, tile_R) so each grid step moves a few MiB and the grid has
    >= 2 steps when possible (keeps both v7x TensorCores busy)."""
    per_image = 3 * R * L * 4
    if per_image <= target_bytes // 2 and N > 1:
        # small images: fuse batch elements per grid step
        bblk = 1
        for cand in range(1, N + 1):
            if N % cand == 0 and cand * per_image <= target_bytes and N // cand >= 2:
                bblk = cand
        return bblk, R
    # large images (or N == 1): tile over the flattened row axis
    if R % 8 == 0 and R >= 8:
        max_rows = max(8, target_bytes // (3 * L * 4))
        tile_r = 8
        for cand in range(8, R + 1, 8):
            if R % cand == 0 and cand <= max_rows:
                tile_r = cand
    else:
        tile_r = R
    if N == 1 and (R // tile_r) == 1 and tile_r % 16 == 0:
        tile_r //= 2                         # force >= 2 grid steps for v7x
    return 1, tile_r


# --------------------------------------------------------------------------
# Kernel
# --------------------------------------------------------------------------
def _ray_sampler_kernel(c2w_ref, intr_ref, dirs_ref, *,
                        res, L, k, tile_rows, bblk):
    """One grid step == (batch block, flattened-row tile).

    c2w_ref : SMEM (N*16,) row-major flattened cam2world matrices
    intr_ref: SMEM (N*9,)  row-major flattened intrinsics
    dirs_ref: VMEM (bblk, 3, tile_rows, L) ray-direction block
    """
    t = pl.program_id(1)
    shape = (tile_rows, L)

    lane = jax.lax.broadcasted_iota(jnp.int32, shape, 1)
    sub = jax.lax.broadcasted_iota(jnp.int32, shape, 0)
    if k == 1:
        # lane dim == image width: sublane = image row, lane = image column
        jj = lane.astype(jnp.float32)
        ii_local = sub.astype(jnp.float32)
    else:
        # packed layout: pixel p = row*L + lane, i = p >> log2(res), j = p & (res-1)
        s = res.bit_length() - 1              # res is a power of two here
        jj = (lane & (res - 1)).astype(jnp.float32)
        ii_local = (sub * k + (lane >> s)).astype(jnp.float32)

    # global image-row offset of this tile, folded into the constant term C
    row_off = (t * (tile_rows * k)).astype(jnp.float32)

    inv_res = jnp.float32(1.0 / res)
    half = jnp.float32(0.5 / res)

    for bb in range(bblk):                    # static unroll over fused batch
        b = pl.program_id(0) * bblk + bb

        o9 = b * 9
        fx = intr_ref[o9 + 0]
        sk = intr_ref[o9 + 1]
        cx = intr_ref[o9 + 2]
        fy = intr_ref[o9 + 4]
        cy = intr_ref[o9 + 5]

        o16 = b * 16
        r00 = c2w_ref[o16 + 0]; r01 = c2w_ref[o16 + 1]; r02 = c2w_ref[o16 + 2]
        r10 = c2w_ref[o16 + 4]; r11 = c2w_ref[o16 + 5]; r12 = c2w_ref[o16 + 6]
        r20 = c2w_ref[o16 + 8]; r21 = c2w_ref[o16 + 9]; r22 = c2w_ref[o16 + 10]

        inv_fx = 1.0 / fx
        inv_fy = 1.0 / fy
        sk_over_fy = sk * inv_fy

        # x_lift = ax*jj + bx*ii + cxl ; y_lift = by*ii + cyl  (affine in pixels)
        ax = inv_res * inv_fx
        bx = -sk_over_fy * ax
        cxl = (half - cx + (cy - half) * sk_over_fy) * inv_fx
        by = inv_res * inv_fy
        cyl = (half - cy) * inv_fy

        # ray_dir_c = A_c*jj + B_c*ii + C_c  (translation column cancels)
        def coeffs(rc0, rc1, rc2):
            A = rc0 * ax
            B = rc0 * bx + rc1 * by
            C = rc0 * cxl + rc1 * cyl + rc2 + B * row_off
            return A, B, C

        Axc, Bxc, Cxc = coeffs(r00, r01, r02)
        Ayc, Byc, Cyc = coeffs(r10, r11, r12)
        Azc, Bzc, Czc = coeffs(r20, r21, r22)

        dx = Axc * jj + Bxc * ii_local + Cxc
        dy = Ayc * jj + Byc * ii_local + Cyc
        dz = Azc * jj + Bzc * ii_local + Czc

        # torch.nn.functional.normalize(dim=2): x / max(||x||, 1e-12)
        inv_n = jax.lax.rsqrt(
            jnp.maximum(dx * dx + dy * dy + dz * dz, jnp.float32(1e-24)))

        dirs_ref[bb, 0, :, :] = (dx * inv_n).astype(dirs_ref.dtype)
        dirs_ref[bb, 1, :, :] = (dy * inv_n).astype(dirs_ref.dtype)
        dirs_ref[bb, 2, :, :] = (dz * inv_n).astype(dirs_ref.dtype)


# --------------------------------------------------------------------------
# Wrapper
# --------------------------------------------------------------------------
def ray_sampler(cam2world_matrix, intrinsics, resolution, *,
                channels_last=True, out_dtype=jnp.float32):
    """Pallas implementation of RaySampler.forward.

    cam2world_matrix: (N, 4, 4) float32
    intrinsics:       (N, 3, 3) float32
    resolution:       python int

    channels_last=True  -> (ray_origins (N, M, 3), ray_dirs (N, M, 3)),
                           matching the PyTorch module (M = resolution**2).
    channels_last=False -> kernel-native layout, no transpose traffic:
                           (cam_locs (N, 3), ray_dirs (N, 3, res, res)).
    out_dtype           -> dtype of ray_dirs stores (bfloat16 halves HBM
                           write bytes on write-bound v5e).
    """
    res = int(resolution)
    N = cam2world_matrix.shape[0]
    M = res * res

    c2w = cam2world_matrix.astype(jnp.float32)
    intr = intrinsics.astype(jnp.float32)

    L, k = _choose_lane_layout(res)
    R = M // L
    bblk, tile_r = _choose_tiling(N, R, L)
    num_b = N // bblk
    num_t = R // tile_r

    kernel = functools.partial(_ray_sampler_kernel, res=res, L=L, k=k,
                               tile_rows=tile_r, bblk=bblk)

    dirs_flat = pl.pallas_call(
        kernel,
        out_shape=jax.ShapeDtypeStruct((N, 3, R, L), out_dtype),
        grid=(num_b, num_t),
        in_specs=[
            pl.BlockSpec(memory_space=pltpu.MemorySpace.SMEM),
            pl.BlockSpec(memory_space=pltpu.MemorySpace.SMEM),
        ],
        out_specs=pl.BlockSpec((bblk, 3, tile_r, L),
                               lambda b, t: (b, 0, t, 0)),
        compiler_params=pltpu.CompilerParams(
            dimension_semantics=("parallel", "parallel")),
    )(c2w.reshape(N * 16), intr.reshape(N * 9))

    cam_locs = c2w[:, :3, 3].astype(out_dtype)                # (N, 3)
    if not channels_last:
        # (N, 3, R, L) and (N, 3, res, res) share the same HBM layout: free.
        return cam_locs, dirs_flat.reshape(N, 3, res, res)

    # PyTorch-compatible (N, M, 3) layout.  The minor-dim-3 permute is done by
    # XLA here (it is cheaper to keep the kernel stores lane-dense and pay the
    # permute only when the PyTorch layout is actually required).
    ray_dirs = jnp.transpose(dirs_flat.reshape(N, 3, M), (0, 2, 1))
    ray_origins = jnp.broadcast_to(cam_locs[:, None, :], (N, M, 3))
    return ray_origins, ray_dirs


# --------------------------------------------------------------------------
# Pure-JAX reference (transcription of the PyTorch forward)
# --------------------------------------------------------------------------
def ray_sampler_reference(c2w, intr, res):
    N = c2w.shape[0]
    M = res * res
    cam_locs = c2w[:, :3, 3]
    fx = intr[:, 0, 0]; fy = intr[:, 1, 1]
    cx = intr[:, 0, 2]; cy = intr[:, 1, 2]; sk = intr[:, 0, 1]

    ii, jj = jnp.meshgrid(jnp.arange(res, dtype=jnp.float32),
                          jnp.arange(res, dtype=jnp.float32), indexing="ij")
    uv = jnp.stack([ii, jj]) * (1.0 / res) + 0.5 / res
    uv = uv[::-1].reshape(2, -1).T                       # (M, 2)
    x_cam = jnp.broadcast_to(uv[:, 0], (N, M))
    y_cam = jnp.broadcast_to(uv[:, 1], (N, M))
    z_cam = jnp.ones((N, M), jnp.float32)

    x_lift = (x_cam - cx[:, None] + cy[:, None] * sk[:, None] / fy[:, None]
              - sk[:, None] * y_cam / fy[:, None]) / fx[:, None] * z_cam
    y_lift = (y_cam - cy[:, None]) / fy[:, None] * z_cam
    cam_rel = jnp.stack([x_lift, y_lift, z_cam, jnp.ones_like(z_cam)], axis=-1)
    world = jnp.einsum("nij,nmj->nmi", c2w, cam_rel)[:, :, :3]
    dirs = world - cam_locs[:, None, :]
    dirs = dirs / jnp.maximum(jnp.linalg.norm(dirs, axis=2, keepdims=True), 1e-12)
    origins = jnp.broadcast_to(cam_locs[:, None, :], (N, M, 3))
    return origins, dirs


# --------------------------------------------------------------------------
# Test
# --------------------------------------------------------------------------
def _make_inputs(key, N):
    k1, k2, k3 = jax.random.split(key, 3)
    rot = jnp.eye(3, dtype=jnp.float32)[None] + 0.1 * jax.random.normal(
        k1, (N, 3, 3), jnp.float32)
    trans = jax.random.normal(k2, (N, 3, 1), jnp.float32)
    top = jnp.concatenate([rot, trans], axis=-1)
    bottom = jnp.broadcast_to(
        jnp.array([[0., 0., 0., 1.]], jnp.float32), (N, 1, 4))
    cam2world = jnp.concatenate([top, bottom], axis=1)

    noise = 0.01 * jax.random.normal(k3, (N, 5), jnp.float32)
    fx = 0.7 + noise[:, 0]
    fy = 0.7 + noise[:, 1]
    cx = 0.5 + noise[:, 2]
    cy = 0.5 + noise[:, 3]
    sk = 0.02 * noise[:, 4]
    zeros = jnp.zeros((N,), jnp.float32)
    ones = jnp.ones((N,), jnp.float32)
    intrinsics = jnp.stack(
        [jnp.stack([fx, sk, cx], axis=-1),
         jnp.stack([zeros, fy, cy], axis=-1),
         jnp.stack([zeros, zeros, ones], axis=-1)], axis=1)
    return cam2world, intrinsics


if __name__ == "__main__":
    base_key = jax.random.PRNGKey(0)

    # (N, res) configs cover: packed-lane path (k>1), multi-row-tile path with
    # folded row offset (k==1, res%128==0), and the batch-fused block path.
    configs = [(2, 16), (1, 128), (4, 64)]

    for idx, (N, resolution) in enumerate(configs):
        key = jax.random.fold_in(base_key, idx)
        cam2world, intrinsics = _make_inputs(key, N)
        M = resolution * resolution

        ray_origins, ray_dirs = ray_sampler(cam2world, intrinsics, resolution)
        jax.block_until_ready((ray_origins, ray_dirs))

        ref_origins, ref_dirs = ray_sampler_reference(
            cam2world, intrinsics, resolution)

        assert ray_origins.shape == (N, M, 3)
        assert ray_dirs.shape == (N, M, 3)
        assert jnp.allclose(ray_origins, ref_origins, rtol=1e-5, atol=1e-5)
        assert jnp.allclose(ray_dirs, ref_dirs, rtol=1e-5, atol=1e-5)

        # planar (no-transpose) fast path must agree with the channels_last one
        cam_locs, dirs_planar = ray_sampler(
            cam2world, intrinsics, resolution, channels_last=False)
        jax.block_until_ready(dirs_planar)
        assert cam_locs.shape == (N, 3)
        assert dirs_planar.shape == (N, 3, resolution, resolution)
        assert jnp.allclose(
            jnp.transpose(dirs_planar.reshape(N, 3, M), (0, 2, 1)),
            ray_dirs, rtol=1e-5, atol=1e-5)

    # bf16 output option (v5e write-bandwidth optimization): smoke check only.
    cam2world, intrinsics = _make_inputs(jax.random.fold_in(base_key, 99), 2)
    o_bf16, d_bf16 = ray_sampler(cam2world, intrinsics, 16,
                                 out_dtype=jnp.bfloat16)
    jax.block_until_ready(d_bf16)
    ref_o, ref_d = ray_sampler_reference(cam2world, intrinsics, 16)
    assert d_bf16.dtype == jnp.bfloat16
    assert jnp.allclose(d_bf16.astype(jnp.float32), ref_d, rtol=2e-2, atol=2e-2)

    print("KERNEL_OK")
</pallas_src>

<mosaic_0001>
module attributes {stable_mosaic.version = 11 : i64} {
  func.func @_ray_sampler_kernel(%arg0: i32, %arg1: i32, %arg2: memref<32xf32, #tpu.memory_space<smem>>, %arg3: memref<18xf32, #tpu.memory_space<smem>>, %arg4: memref<1x3x1x256xf32, #tpu.memory_space<vmem>>) attributes {dimension_semantics = [#tpu.dimension_semantics<parallel>, #tpu.dimension_semantics<parallel>], iteration_bounds = array<i64: 2, 1>, scalar_prefetch = 0 : i64, scratch_operands = 0 : i64, tpu.core_type = #tpu.core_type<tc>, window_params = [{transform_indices = @transform_0, window_bounds = array<i64: 32>}, {transform_indices = @transform_1, window_bounds = array<i64: 18>}, {transform_indices = @transform_2, window_bounds = array<i64: 1, 3, 1, 256>}]} {
    %0 = tpu.iota {dimensions = array<i32: 1>} : vector<1x256xi32>
    %1 = tpu.iota {dimensions = array<i32: 0>} : vector<1x256xi32>
    %c15_i32 = arith.constant 15 : i32
    %2 = vector.broadcast %c15_i32 : i32 to vector<1x256xi32>
    %3 = arith.andi %0, %2 : vector<1x256xi32>
    %4 = arith.sitofp %3 : vector<1x256xi32> to vector<1x256xf32>
    %c16_i32 = arith.constant 16 : i32
    %5 = vector.broadcast %c16_i32 : i32 to vector<1x256xi32>
    %6 = arith.muli %1, %5 : vector<1x256xi32>
    %c4_i32 = arith.constant 4 : i32
    %7 = vector.broadcast %c4_i32 : i32 to vector<1x256xi32>
    %8 = arith.shrsi %0, %7 : vector<1x256xi32>
    %9 = arith.addi %6, %8 : vector<1x256xi32>
    %10 = arith.sitofp %9 : vector<1x256xi32> to vector<1x256xf32>
    %c16_i32_0 = arith.constant 16 : i32
    %11 = arith.muli %arg1, %c16_i32_0 : i32
    %12 = arith.sitofp %11 : i32 to f32
    %c1_i32 = arith.constant 1 : i32
    %13 = arith.muli %arg0, %c1_i32 : i32
    %c0_i32 = arith.constant 0 : i32
    %14 = arith.addi %13, %c0_i32 : i32
    %c9_i32 = arith.constant 9 : i32
    %15 = arith.muli %14, %c9_i32 : i32
    %c0_i32_1 = arith.constant 0 : i32
    %16 = arith.addi %15, %c0_i32_1 : i32
    %17 = arith.index_cast %16 : i32 to index
    %18 = memref.load %arg3[%17] : memref<18xf32, #tpu.memory_space<smem>>
    %c1_i32_2 = arith.constant 1 : i32
    %19 = arith.addi %15, %c1_i32_2 : i32
    %20 = arith.index_cast %19 : i32 to index
    %21 = memref.load %arg3[%20] : memref<18xf32, #tpu.memory_space<smem>>
    %c2_i32 = arith.constant 2 : i32
    %22 = arith.addi %15, %c2_i32 : i32
    %23 = arith.index_cast %22 : i32 to index
    %24 = memref.load %arg3[%23] : memref<18xf32, #tpu.memory_space<smem>>
    %c4_i32_3 = arith.constant 4 : i32
    %25 = arith.addi %15, %c4_i32_3 : i32
    %26 = arith.index_cast %25 : i32 to index
    %27 = memref.load %arg3[%26] : memref<18xf32, #tpu.memory_space<smem>>
    %c5_i32 = arith.constant 5 : i32
    %28 = arith.addi %15, %c5_i32 : i32
    %29 = arith.index_cast %28 : i32 to index
    %30 = memref.load %arg3[%29] : memref<18xf32, #tpu.memory_space<smem>>
    %c16_i32_4 = arith.constant 16 : i32
    %31 = arith.muli %14, %c16_i32_4 : i32
    %c0_i32_5 = arith.constant 0 : i32
    %32 = arith.addi %31, %c0_i32_5 : i32
    %33 = arith.index_cast %32 : i32 to index
    %34 = memref.load %arg2[%33] : memref<32xf32, #tpu.memory_space<smem>>
    %c1_i32_6 = arith.constant 1 : i32
    %35 = arith.addi %31, %c1_i32_6 : i32
    %36 = arith.index_cast %35 : i32 to index
    %37 = memref.load %arg2[%36] : memref<32xf32, #tpu.memory_space<smem>>
    %c2_i32_7 = arith.constant 2 : i32
    %38 = arith.addi %31, %c2_i32_7 : i32
    %39 = arith.index_cast %38 : i32 to index
    %40 = memref.load %arg2[%39] : memref<32xf32, #tpu.memory_space<smem>>
    %c4_i32_8 = arith.constant 4 : i32
    %41 = arith.addi %31, %c4_i32_8 : i32
    %42 = arith.index_cast %41 : i32 to index
    %43 = memref.load %arg2[%42] : memref<32xf32, #tpu.memory_space<smem>>
    %c5_i32_9 = arith.constant 5 : i32
    %44 = arith.addi %31, %c5_i32_9 : i32
    %45 = arith.index_cast %44 : i32 to index
    %46 = memref.load %arg2[%45] : memref<32xf32, #tpu.memory_space<smem>>
    %c6_i32 = arith.constant 6 : i32
    %47 = arith.addi %31, %c6_i32 : i32
    %48 = arith.index_cast %47 : i32 to index
    %49 = memref.load %arg2[%48] : memref<32xf32, #tpu.memory_space<smem>>
    %c8_i32 = arith.constant 8 : i32
    %50 = arith.addi %31, %c8_i32 : i32
    %51 = arith.index_cast %50 : i32 to index
    %52 = memref.load %arg2[%51] : memref<32xf32, #tpu.memory_space<smem>>
    %c9_i32_10 = arith.constant 9 : i32
    %53 = arith.addi %31, %c9_i32_10 : i32
    %54 = arith.index_cast %53 : i32 to index
    %55 = memref.load %arg2[%54] : memref<32xf32, #tpu.memory_space<smem>>
    %c10_i32 = arith.constant 10 : i32
    %56 = arith.addi %31, %c10_i32 : i32
    %57 = arith.index_cast %56 : i32 to index
    %58 = memref.load %arg2[%57] : memref<32xf32, #tpu.memory_space<smem>>
    %cst = arith.constant 1.000000e+00 : f32
    %59 = arith.divf %cst, %18 : f32
    %cst_11 = arith.constant 1.000000e+00 : f32
    %60 = arith.divf %cst_11, %27 : f32
    %61 = arith.mulf %21, %60 : f32
    %cst_12 = arith.constant 6.250000e-02 : f32
    %62 = arith.mulf %cst_12, %59 : f32
    %cst_13 = arith.constant 0.000000e+00 : f32
    %63 = arith.subf %cst_13, %61 : f32
    %64 = arith.mulf %63, %62 : f32
    %cst_14 = arith.constant 3.125000e-02 : f32
    %65 = arith.subf %cst_14, %24 : f32
    %cst_15 = arith.constant 3.125000e-02 : f32
    %66 = arith.subf %30, %cst_15 : f32
    %67 = arith.mulf %66, %61 : f32
    %68 = arith.addf %65, %67 : f32
    %69 = arith.mulf %68, %59 : f32
    %cst_16 = arith.constant 6.250000e-02 : f32
    %70 = arith.mulf %cst_16, %60 : f32
    %cst_17 = arith.constant 3.125000e-02 : f32
    %71 = arith.subf %cst_17, %30 : f32
    %72 = arith.mulf %71, %60 : f32
    %73 = arith.mulf %34, %62 : f32
    %74 = arith.mulf %34, %64 : f32
    %75 = arith.mulf %37, %70 : f32
    %76 = arith.addf %74, %75 : f32
    %77 = arith.mulf %34, %69 : f32
    %78 = arith.mulf %37, %72 : f32
    %79 = arith.addf %77, %78 : f32
    %80 = arith.addf %79, %40 : f32
    %81 = arith.mulf %76, %12 : f32
    %82 = arith.addf %80, %81 : f32
    %83 = arith.mulf %43, %62 : f32
    %84 = arith.mulf %43, %64 : f32
    %85 = arith.mulf %46, %70 : f32
    %86 = arith.addf %84, %85 : f32
    %87 = arith.mulf %43, %69 : f32
    %88 = arith.mulf %46, %72 : f32
    %89 = arith.addf %87, %88 : f32
    %90 = arith.addf %89, %49 : f32
    %91 = arith.mulf %86, %12 : f32
    %92 = arith.addf %90, %91 : f32
    %93 = arith.mulf %52, %62 : f32
    %94 = arith.mulf %52, %64 : f32
    %95 = arith.mulf %55, %70 : f32
    %96 = arith.addf %94, %95 : f32
    %97 = arith.mulf %52, %69 : f32
    %98 = arith.mulf %55, %72 : f32
    %99 = arith.addf %97, %98 : f32
    %100 = arith.addf %99, %58 : f32
    %101 = arith.mulf %96, %12 : f32
    %102 = arith.addf %100, %101 : f32
    %103 = vector.broadcast %73 : f32 to vector<1x256xf32>
    %104 = arith.mulf %103, %4 : vector<1x256xf32>
    %105 = vector.broadcast %76 : f32 to vector<1x256xf32>
    %106 = arith.mulf %105, %10 : vector<1x256xf32>
    %107 = arith.addf %104, %106 : vector<1x256xf32>
    %108 = vector.broadcast %82 : f32 to vector<1x256xf32>
    %109 = arith.addf %107, %108 : vector<1x256xf32>
    %110 = vector.broadcast %83 : f32 to vector<1x256xf32>
    %111 = arith.mulf %110, %4 : vector<1x256xf32>
    %112 = vector.broadcast %86 : f32 to vector<1x256xf32>
    %113 = arith.mulf %112, %10 : vector<1x256xf32>
    %114 = arith.addf %111, %113 : vector<1x256xf32>
    %115 = vector.broadcast %92 : f32 to vector<1x256xf32>
    %116 = arith.addf %114, %115 : vector<1x256xf32>
    %117 = vector.broadcast %93 : f32 to vector<1x256xf32>
    %118 = arith.mulf %117, %4 : vector<1x256xf32>
    %119 = vector.broadcast %96 : f32 to vector<1x256xf32>
    %120 = arith.mulf %119, %10 : vector<1x256xf32>
    %121 = arith.addf %118, %120 : vector<1x256xf32>
    %122 = vector.broadcast %102 : f32 to vector<1x256xf32>
    %123 = arith.addf %121, %122 : vector<1x256xf32>
    %124 = arith.mulf %109, %109 : vector<1x256xf32>
    %125 = arith.mulf %116, %116 : vector<1x256xf32>
    %126 = arith.addf %124, %125 : vector<1x256xf32>
    %127 = arith.mulf %123, %123 : vector<1x256xf32>
    %128 = arith.addf %126, %127 : vector<1x256xf32>
    %cst_18 = arith.constant 1.000000e-24 : f32
    %129 = vector.broadcast %cst_18 : f32 to vector<1x256xf32>
    %130 = arith.maximumf %128, %129 : vector<1x256xf32>
    %131 = math.rsqrt %130 : vector<1x256xf32>
    %132 = arith.mulf %109, %131 : vector<1x256xf32>
    %c0 = arith.constant 0 : index
    %c0_19 = arith.constant 0 : index
    %c0_20 = arith.constant 0 : index
    %c0_21 = arith.constant 0 : index
    %133 = vector.load %arg4[%c0, %c0_19, %c0_20, %c0_21] : memref<1x3x1x256xf32, #tpu.memory_space<vmem>>, vector<1x1x1x256xf32>
    %134 = vector.shape_cast %133 : vector<1x1x1x256xf32> to vector<1x256xf32>
    %135 = vector.shape_cast %132 : vector<1x256xf32> to vector<1x1x1x256xf32>
    tpu.vector_store %arg4[%c0, %c0_19, %c0_20, %c0_21], %135 {strides = array<i32>} : memref<1x3x1x256xf32, #tpu.memory_space<vmem>>, vector<1x1x1x256xf32>,
    %136 = arith.mulf %116, %131 : vector<1x256xf32>
    %c0_22 = arith.constant 0 : index
    %c1 = arith.constant 1 : index
    %c0_23 = arith.constant 0 : index
    %c0_24 = arith.constant 0 : index
    %137 = vector.load %arg4[%c0_22, %c1, %c0_23, %c0_24] : memref<1x3x1x256xf32, #tpu.memory_space<vmem>>, vector<1x1x1x256xf32>
    %138 = vector.shape_cast %137 : vector<1x1x1x256xf32> to vector<1x256xf32>
    %139 = vector.shape_cast %136 : vector<1x256xf32> to vector<1x1x1x256xf32>
    tpu.vector_store %arg4[%c0_22, %c1, %c0_23, %c0_24], %139 {strides = array<i32>} : memref<1x3x1x256xf32, #tpu.memory_space<vmem>>, vector<1x1x1x256xf32>,
    %140 = arith.mulf %123, %131 : vector<1x256xf32>
    %c0_25 = arith.constant 0 : index
    %c2 = arith.constant 2 : index
    %c0_26 = arith.constant 0 : index
    %c0_27 = arith.constant 0 : index
    %141 = vector.load %arg4[%c0_25, %c2, %c0_26, %c0_27] : memref<1x3x1x256xf32, #tpu.memory_space<vmem>>, vector<1x1x1x256xf32>
    %142 = vector.shape_cast %141 : vector<1x1x1x256xf32> to vector<1x256xf32>
    %143 = vector.shape_cast %140 : vector<1x256xf32> to vector<1x1x1x256xf32>
    tpu.vector_store %arg4[%c0_25, %c2, %c0_26, %c0_27], %143 {strides = array<i32>} : memref<1x3x1x256xf32, #tpu.memory_space<vmem>>, vector<1x1x1x256xf32>,
    return
  }
  func.func @transform_0(%arg0: i32, %arg1: i32) -> i32 {
    %c0_i32 = arith.constant 0 : i32
    %c0_i32_0 = arith.constant 0 : i32
    return %c0_i32 : i32
  }
  func.func @transform_1(%arg0: i32, %arg1: i32) -> i32 {
    %c0_i32 = arith.constant 0 : i32
    %c0_i32_0 = arith.constant 0 : i32
    return %c0_i32 : i32
  }
  func.func @transform_2(%arg0: i32, %arg1: i32) -> (i32, i32, i32, i32) {
    %c0_i32 = arith.constant 0 : i32
    %c0_i32_0 = arith.constant 0 : i32
    %c0_i32_1 = arith.constant 0 : i32
    return %arg0, %c0_i32, %arg1, %c0_i32_0 : i32, i32, i32, i32
  }
}

</mosaic_0001>

<bundles_post_ra>
// kernel: tpu_custom_call.1
= control target key start
LH: loop header
LB: loop body
LE: loop exit
PB: predicated region body
PF: predicated region fallthrough
CT: control target
= control target key end

     0   :  { %s962_s0 = inlined_call_operand.hbm [shape: f32[32], index: 0, kind: input, shape index: {}]   ;;  %s963_s1 = inlined_call_operand.vmem [shape: f32[18], index: 1, kind: input, shape index: {}]   ;;  %s964_s2 = inlined_call_operand.hbm [shape: f32[2,3,1,256], index: 2, kind: output, shape index: {}]  }
   0x1   :  { %970 = sst [smem:[#allocation17_spill]] %s962_s0 }
   0x2   :  { %971 = sst [smem:[#allocation18_spill]] %s963_s1 }
   0x3   :  { %7 = vsyncpa [#allocation4], 0 }
   0x4   :  { %8 = vsyncpa [#allocation5], 0 }
   0x5   :  { %9 = vsyncpa [#allocation3], 0 }
   0x6   :  { %11 = vsyncpa [#allocation3 + $0x1], 0  ;;  %s713_s9 = smov 0   ;;  %s715_s10 = smov 0  }
   0x7   :  { %s717_s11 = smov 0   ;;  %s719_s12 = smov 0  }
   0x8   :  { %s721_s13 = smov 0   ;;  %s723_s14 = smov 0  }
   0x9 LB: > { %972 = sst [smem:[#allocation11_spill]] %s670_s9  ;;  %s472_s15 = sadd.s32 4294967295, %s690_s14   ;;  %s690_s14 = sphi %s723_s14, %s17_s14   ;;  %s686_s13 = sphi %s721_s13, %s993_s13   ;;  %s682_s12 = sphi %s719_s12, %s992_s12   ;;  %s678_s11 = sphi %s717_s11, %s991_s11   ;;  %s674_s10 = sphi %s715_s10, %s995_s10   ;;  %s670_s9 = sphi %s713_s9, %s994_s9  }
   0xa   : > { %973 = sst [smem:[#allocation12_spill]] %s678_s11  ;;  %s473_s16 = sadd.s32 4294967294, %s690_s14  }
   0xb   : > { %974 = sst [smem:[#allocation13_spill]] %s686_s13  ;;  %s29_s17 = sadd.s32 1, %s686_s13 }
   0xc   : > { %s80_s18 = sadd.s32 1, %s678_s11  ;;  %p31_p0 = scmp.ge.s32.totalorder %s29_s17, 2 }
   0xd   : > { %p90_p1 = scmp.ne.s32.totalorder %s678_s11, %s674_s10  ;;  %p91_p2 = scmp.eq.s32.totalorder %s472_s15, 1 }
   0xe   : > { %p96_p3 = scmp.ne.s32.totalorder %s674_s10, %s670_s9  ;;  %s997_s17 = smov (%p31_p0, %s29_s17), 0 }
   0xf   : > { %975 = sst [smem:[#allocation14_spill]] %s997_s17  ;;  %p753_p4 = por %p91_p2, %p90_p1 }
  0x10   : > { %p97_p5 = scmp.eq.s32.totalorder %s473_s16, 1  ;;  %s75_s20 = ssub.s32 %s686_s13, %s997_s17 }
  0x11   : > { %p474_p6 = scmp.ge.s32.totalorder %s690_s14, 1  ;;  %p78_p7 = scmp.eq.s32.totalorder %s75_s20, 0 }
  0x12   : > { %p760_p8 = por %p97_p5, %p96_p3  ;;  %p104_p9 = scmp.lt.s32.totalorder %s690_s14, 3 }
  0x13   : > { %s766_s22 = scalar_select %p78_p7, %s678_s11, %s80_s18  }
  0x14   : > { %s977_s21 = scalar_select %p760_p8, 1, 0 }
  0x15   : > { %979 = sst [smem:[#allocation16_spill]] %s766_s22  ;;  %p768_p10 = pnand %p474_p6, %p104_p9 }
  0x16   : > { %978 = sst [smem:[#allocation15_spill]] %s977_s21  ;;  %p772_p11 = scmp.eq.s32.totalorder %s472_s15, 0 }
  0x17   : > { %p503_p12 = pneg %p768_p10  ;;  %s982_s1 = sld [smem:[#allocation18_spill]] }
  0x18   : > { %s692_s29 = smov [#allocation2]   ;;  %s984_s0 = sld [smem:[#allocation17_spill]] }
  0x19   : > { %p783_p13 = pnand %p772_p11, %p503_p12 }
  0x1b   : > { %p593_p1 = pneg %p783_p13 }
  0x1d   : > { %s126_s27 = sshll.u32 %s982_s1, 4  ;;  %s127_s27 = int_to_ptr.vmem [resolvable:$true] %s126_s27 }
  0x1e   : > { %506 = dma.hbm_to_smem (!%p783_p13), %s984_s0, 16, %s692_s29, [#allocation4]  }
  0x1f   : > { %s591_s4 = scalar_lea.vmem %s127_s27, 16  ;;  %p599_p5 = scmp.lt.s32.totalorder %s127_s27, %s127_s27 }
  0x20   : > { %p592_p0 = scmp.ne.s32.totalorder %s127_s27, %s591_s4  ;;  %p600_p6 = scmp.lt.s32.totalorder %s591_s4, %s591_s4 }
  0x22   : > { %p594_p2 = pnand %p593_p1, %p592_p0  ;;  %p601_p7 = por %p600_p6, %p599_p5 }
  0x24   : > { %p595_p3 = pneg %p594_p2 }
  0x26   : > { %p602_p9 = pnand %p601_p7, %p595_p3 }
  0x28   : > { %605 = shalt.err (!%p602_p9)
}
  0x29   : > { %s693_s5 = smov [#allocation6]   ;;  %139 = sbr.rel (%p768_p10) target bundleno = 201 (0xc9), region = 28 }
  0x2a   : > { %509 = dma.vmem_to_smem (!%p783_p13), %s127_s27, 16, %s693_s5, [#allocation5]  }
  0x2e   : > { %657 = dma.done.wait (%p772_p11), [#allocation4], 16  }
  0x2f   : > { %659 = vsyncadd (%p772_p11), [#allocation4], 4294967280 }
  0x30   : > { %661 = dma.done.wait (%p772_p11), [#allocation5], 16  }
  0x31   : > { %663 = vsyncadd (%p772_p11), [#allocation5], 4294967280 }
  0x32   : > { %149 = sfence }
  0x33   : > { %s179_s6 = smul.u32 9, %s682_s12  ;;  %s808_s16 = sshll.u32 %s682_s12, 4  ;;  %v161_v4 = vlaneseq }
  0x34   : > { %s811_s23 = sld [smem:[#allocation2 + %s808_s16]]  ;;  %s195_s24 = sadd.s32 4, %s808_s16 }
  0x35   : > { %s180_s7 = sld [smem:[#allocation6 + %s179_s6]]  ;;  %s185_s8 = sadd.s32 4, %s179_s6  ;;  %v162_v5 = vand.u32 127, %v161_v4  ;;  %v836_v6 = vshrl.u32 %v161_v4, 7  ;;  %vm324_vm0 = vcmp.lt.s32.totalorder %v161_v4, 256 }
  0x36   : > { %s186_s15 = sld [smem:[#allocation6 + %s185_s8]]  ;;  %s181_s18 = sadd.s32 1, %s179_s6 }
  0x37   : > { %s183_s20 = sadd.s32 2, %s179_s6  ;;  %s201_s25 = sadd.s32 8, %s808_s16  ;;  %v163_v7 = vadd.s32 128, %v162_v5  ;;  %v170_v8 = vmul.u32 16, %v836_v6  ;;  %v171_v9 = vshra.s32 %v162_v5, 4  ;;  %v166_v13 = vand.u32 15, %v162_v5 }
  0x38   : > { %s182_s26 = sld [smem:[#allocation6 + %s181_s18]]  ;;  %s187_s28 = sadd.s32 5, %s179_s6 }
  0x39   : > { %s815_s27 = sld [smem:[#allocation6 + %s183_s20]]  ;;  %s191_s3 = sadd.s32 1, %s808_s16  ;;  %v172_v10 = vshra.s32 %v163_v7, 4  ;;  %v173_v11 = vadd.s32 %v171_v9, %v170_v8  ;;  %v167_v14 = vand.u32 15, %v163_v7  ;;  %v168_v18 = vcvt.s32.f32 %v166_v13 }
  0x3a   : > { %s817_s29 = sld [smem:[#allocation2 + %s195_s24]]  ;;  %s203_s1 = sadd.s32 9, %s808_s16 }
  0x3b   : > { %v207_v0 = vstv %s180_s7  ;;  %s819_s30 = sld [smem:[#allocation2 + %s201_s25]]  ;;  %s193_s7 = sadd.s32 2, %s808_s16  ;;  %v174_v12 = vadd.s32 %v172_v10, %v170_v8  ;;  %v175_v15 = vcvt.s32.f32 %v173_v11  ;;  %v169_v19 = vcvt.s32.f32 %v167_v14 }
  0x3c   : > { %572 = vrcp.f32 %v207_v0  ;;  %v210_v1 = vstv %s186_s15  ;;  %s188_s4 = sld [smem:[#allocation6 + %s187_s28]]  ;;  %s197_s15 = sadd.s32 5, %s808_s16  ;;  %v694_v0 = vmov 1966171168  }
  0x3d   : > { %574 = vrcp.f32 %v210_v1  ;;  %s822_s5 = sld [smem:[#allocation2 + %s191_s3]]  ;;  %v176_v16 = vcvt.s32.f32 %v174_v12  ;;  %v308_v1 = vunpack.c.l.s4 %v694_v0 }
  0x3e   : > { %s848_s3 = sld [smem:[#allocation2 + %s197_s15]]  ;;  %s205_s15 = sadd.s32 10, %s808_s16 }
  0x3f   : > { %s217_s24 = ssub.f32 0.03125, %s815_s27 }
  0x42   : > { %s481_s28 = sadd.f32 -0.03125, %s188_s4 }
  0x43   : > { %s223_s17 = ssub.f32 0.03125, %s188_s4 }
  0x49   : > { %v573_v2 = vpop.eup %572 }
  0x4a   : > { %v575_v3 = vpop.eup %574  ;;  %488 = vpush %v573_v2  ;;  %v309_v2 = vunpack.c.0.s8 %v308_v1 }
  0x4b   : > { %490 = vpush %v575_v3 }
  0x4c   : > { %v312_v11 = vsub.s32 %v309_v2, %v836_v6 }
  0x7b   : > { %s825_s8 = spop %488 }
  0x7c   : > { %s830_s18 = smul.f32 0.0625, %s825_s8  ;;  %s491_s6 = spop %490 }
  0x7d   : > { %s213_s20 = smul.f32 %s491_s6, %s182_s26  ;;  %s846_s26 = sld [smem:[#allocation2 + %s193_s7]] }
  0x7e   : > { %s850_s25 = smul.f32 0.0625, %s491_s6  ;;  %s199_s7 = sadd.s32 6, %s808_s16 }
  0x7f   : > { %s215_s0 = ssub.f32 0.0, %s213_s20  ;;  %s219_s27 = smul.f32 %s481_s28, %s213_s20 }
  0x80   : > { %s227_s20 = smul.f32 %s850_s25, %s822_s5  ;;  %s870_s16 = sld [smem:[#allocation2 + %s199_s7]] }
  0x81   : > { %s843_s13 = smul.f32 %s215_s0, %s830_s18  ;;  %s220_s4 = sadd.f32 %s219_s27, %s217_s24 }
  0x82   : > { %s852_s0 = smul.f32 %s491_s6, %s223_s17  ;;  %s864_s17 = sld [smem:[#allocation2 + %s203_s1]] }
  0x83   : > { %s226_s22 = smul.f32 %s843_s13, %s811_s23  ;;  %s874_s1 = sld [smem:[#allocation2 + %s205_s15]] }
  0x84   : > { %s859_s11 = smul.f32 %s825_s8, %s220_s4 }
  0x85   : > { %s228_s24 = sadd.f32 %s227_s20, %s226_s22  ;;  %s230_s28 = smul.f32 %s852_s0, %s822_s5 }
  0x86   : > { %s229_s6 = smul.f32 %s859_s11, %s811_s23 }
  0x87   : > { %s236_s8 = smul.f32 %s843_s13, %s817_s29  ;;  %v258_v17 = vstv %s228_s24 }
  0x88   : > { %s231_s27 = sadd.f32 %s230_s28, %s229_s6  ;;  %s233_s4 = smul.f32 0.0, %s228_s24  ;;  %v259_v21 = vmul.f32 %v258_v17, %v175_v15  ;;  %v260_v22 = vmul.f32 %v258_v17, %v176_v16 }
  0x89   : > { %s237_s22 = smul.f32 %s850_s25, %s848_s3 }
  0x8a   : > { %s985_s5 = smul.f32 %s830_s18, %s811_s23  ;;  %s232_s20 = sadd.f32 %s231_s27, %s846_s26 }
  0x8b   : > { %s239_s7 = smul.f32 %s859_s11, %s817_s29  ;;  %s238_s21 = sadd.f32 %s237_s22, %s236_s8 }
  0x8c   : > { %v255_v20 = vstv %s985_s5  ;;  %s240_s9 = smul.f32 %s852_s0, %s848_s3  ;;  %s234_s6 = sadd.f32 %s233_s4, %s232_s20 }
  0x8d   : > { %s246_s24 = smul.f32 %s843_s13, %s819_s30  ;;  %v256_v23 = vmul.f32 %v255_v20, %v168_v18  ;;  %v257_v24 = vmul.f32 %v255_v20, %v169_v19  ;;  %v269_v26 = vstv %s238_s21 }
  0x8e   : > { %s986_s15 = smul.f32 %s830_s18, %s817_s29  ;;  %s241_s23 = sadd.f32 %s240_s9, %s239_s7  ;;  %v263_v27 = vstv %s234_s6  ;;  %v270_v28 = vmul.f32 %v269_v26, %v175_v15  ;;  %v271_v29 = vmul.f32 %v269_v26, %v176_v16 }
  0x8f   : > { %s243_s28 = smul.f32 0.0, %s238_s21  ;;  %v261_v30 = vadd.f32 %v259_v21, %v256_v23  ;;  %v262_v31 = vadd.f32 %v260_v22, %v257_v24  ;;  %s695_s7 = smov [#allocation7]  }
  0x90   : > { %v266_v25 = vstv %s986_s15  ;;  %s247_s26 = smul.f32 %s850_s25, %s864_s17  ;;  %s242_s3 = sadd.f32 %s241_s23, %s870_s16 }
  0x91   : > { %s249_s8 = smul.f32 %s859_s11, %s819_s30  ;;  %v267_v32 = vmul.f32 %v266_v25, %v168_v18  ;;  %v268_v33 = vmul.f32 %v266_v25, %v169_v19  ;;  %v264_v34 = vadd.f32 %v263_v27, %v261_v30  ;;  %v265_v35 = vadd.f32 %v263_v27, %v262_v31  ;;  %s610_s6 = sshll.u32 %s695_s7, 4  ;;  %s611_s6 = int_to_ptr.vmem [resolvable:$false] %s610_s6 }
  0x92   : > { %s248_s13 = sadd.f32 %s247_s26, %s246_s24  ;;  %s250_s29 = smul.f32 %s852_s0, %s864_s17 }
  0x93   : > { %s244_s27 = sadd.f32 %s243_s28, %s242_s3  ;;  %s987_s9 = smul.f32 %s830_s18, %s819_s30  ;;  %v272_v37 = vadd.f32 %v270_v28, %v267_v32  ;;  %v273_v38 = vadd.f32 %v271_v29, %v268_v33  ;;  %v288_v47 = vmul.f32 %v264_v34, %v264_v34  ;;  %v289_v48 = vmul.f32 %v265_v35, %v265_v35 }
  0x94   : > { %s251_s21 = sadd.f32 %s250_s29, %s249_s8  ;;  %v280_v39 = vstv %s248_s13  ;;  %s253_s25 = smul.f32 0.0, %s248_s13 }
  0x95   : > { %v277_v36 = vstv %s987_s9  ;;  %v274_v40 = vstv %s244_s27  ;;  %v281_v41 = vmul.f32 %v280_v39, %v175_v15  ;;  %v282_v42 = vmul.f32 %v280_v39, %v176_v16  ;;  %s158_s30 = sand.u32 1, %s674_s10   ;;  %s492_s17 = smul.u32 96, %s682_s12 }
  0x96   : > { %s252_s11 = sadd.f32 %s251_s21, %s874_s1  ;;  %v275_v43 = vadd.f32 %v274_v40, %v272_v37  ;;  %v276_v44 = vadd.f32 %v274_v40, %v273_v38  ;;  %v278_v45 = vmul.f32 %v277_v36, %v168_v18  ;;  %v279_v46 = vmul.f32 %v277_v36, %v169_v19  ;;  %s487_s18 = smul.u32 6, %s158_s30 }
  0x97   : > { %s911_s5 = scalar_lea.hbm %s964_s2, %s492_s17  ;;  %s917_s12 = scalar_lea.sflag [#allocation3], %s158_s30 }
  0x98   : > { %s254_s0 = sadd.f32 %s253_s25, %s252_s11  ;;  %v290_v49 = vmul.f32 %v275_v43, %v275_v43  ;;  %v291_v50 = vmul.f32 %v276_v44, %v276_v44  ;;  %v283_v51 = vadd.f32 %v281_v41, %v278_v45  ;;  %v284_v52 = vadd.f32 %v282_v42, %v279_v46  ;;  %s160_s16 = scalar_lea.vmem [#allocation7], %s487_s18 }
  0x99   : > { %s387_s4 = sshll.u32 %s160_s16, 4  ;;  %s612_s24 = scalar_lea.vmem %s611_s6, 192  ;;  %s913_s4 = int_to_ptr.vmem [resolvable:$true] %s387_s4 }
  0x9a   : > { %v285_v53 = vstv %s254_s0  ;;  %v292_v56 = vadd.f32 %v290_v49, %v288_v47  ;;  %v293_v57 = vadd.f32 %v291_v50, %v289_v48  ;;  %s606_s20 = scalar_lea.vmem %s913_s4, 96  ;;  %p613_p13 = scmp.lt.s32.totalorder %s913_s4, %s611_s6 }
  0x9b   : > { %v286_v54 = vadd.f32 %v285_v53, %v283_v51  ;;  %v287_v55 = vadd.f32 %v285_v53, %v284_v52  ;;  %p607_p10 = scmp.ne.s32.totalorder %s913_s4, %s606_s20  ;;  %p614_p0 = scmp.lt.s32.totalorder %s612_s24, %s606_s20 }
  0x9d   : > { %v294_v58 = vmul.f32 %v286_v54, %v286_v54  ;;  %v295_v59 = vmul.f32 %v287_v55, %v287_v55  ;;  %p608_p11 = pnand %p607_p10, %p753_p4  ;;  %p615_p1 = por %p614_p0, %p613_p13 }
  0x9f   : > { %v296_v60 = vadd.f32 %v294_v58, %v292_v56  ;;  %v297_v61 = vadd.f32 %v295_v59, %v293_v57  ;;  %p609_p12 = pneg %p608_p11 }
  0xa1   : > { %v298_v62 = vmax.f32 %v296_v60, 1e-24  ;;  %v299_v63 = vmax.f32 %v297_v61, 1e-24  ;;  %p616_p2 = pnand %p615_p1, %p609_p12 }
  0xa3   : > { %576 = vrsqrt.f32 %v298_v62 }
  0xa4   : > { %578 = vrsqrt.f32 %v299_v63 }
  0xb0   : > { %v577_v3 = vpop.eup %576 }
  0xb1   : > { %v579_v5 = vpop.eup %578  ;;  %v302_v7 = vmul.f32 %v577_v3, %v264_v34  ;;  %v327_v8 = vmul.f32 %v577_v3, %v275_v43  ;;  %v349_v9 = vmul.f32 %v577_v3, %v286_v54 }
  0xb2   : > { %v303_v10 = vmul.f32 %v579_v5, %v265_v35  ;;  %v328_v12 = vmul.f32 %v579_v5, %v276_v44  ;;  %v350_v13 = vmul.f32 %v579_v5, %v287_v55 }
  0xb4   : > { %v306_v14 = vcombine.low %v302_v7, %v303_v10  ;;  %v331_v15 = vcombine.low %v327_v8, %v328_v12  ;;  %v353_v16 = vcombine.low %v349_v9, %v350_v13 }
  0xb6   : > { %v313_v17 = vrot.slane %v306_v14, %v312_v11  ;;  %v338_v18 = vrot.slane %v331_v15, %v312_v11  ;;  %v360_v19 = vrot.slane %v353_v16, %v312_v11 }
  0xb8   : > { %v320_v6 = vrot.slane %v313_v17, %v312_v11  ;;  %v345_v20 = vrot.slane %v338_v18, %v312_v11  ;;  %v367_v21 = vrot.slane %v360_v19, %v312_v11 }
  0xba   : > { %326 = vst.msk [vmem:[%s160_s16] sm:$0x3] %vm324_vm0, %v320_v6  ;;  %482 = vst.msk [vmem:[%s160_s16 + $0x2] sm:$0x3] %vm324_vm0, %v345_v20 }
  0xbb   : > { %483 = vst.msk [vmem:[%s160_s16 + $0x4] sm:$0x3] %vm324_vm0, %v367_v21 }
  0xbc   : > { %619 = shalt.err (!%p616_p2)
}
  0xbd   : > { %s620_s15 = scalar_lea.hbm %s911_s5, 96  ;;  %s624_s26 = scalar_lea.hbm %s964_s2, 192 }
  0xbe   : > { %p621_p3 = scmp.ne.s32.totalorder %s911_s5, %s620_s15  ;;  %p625_p7 = scmp.lt.s32.totalorder %s911_s5, %s964_s2 }
  0xbf   : > { %p626_p9 = scmp.lt.s32.totalorder %s624_s26, %s620_s15 }
  0xc0   : > { %p622_p5 = pnand %p621_p3, %p753_p4 }
  0xc1   : > { %p627_p10 = por %p626_p9, %p625_p7 }
  0xc2   : > { %p623_p6 = pneg %p622_p5 }
  0xc4   : > { %p628_p11 = pnand %p627_p10, %p623_p6 }
  0xc6   : > { %631 = shalt.err (!%p628_p11)
}
  0xc7   : > { %s696_s13 = smov 32   ;;  %s697_s29 = smov 2  }
  0xc8   : > { %501 = dma.vmem_to_hbm [thread:$0]  (%p753_p4), %s913_s4, 96, %s911_s5, %s917_s12, %s696_s13, %s696_s13, %s697_s29  }
  0xc9 PF: > { %s988_s27 = sld [smem:[#allocation11_spill]]  ;;  %p518_p12 = scmp.ge.s32.totalorder %s690_s14, 2 }
  0xcb   : > { %p511_p13 = pnand %p518_p12, %p760_p8 }
  0xcd   : > { %p512_p0 = pneg %p511_p13 }
  0xcf   : > { %s402_s21 = sand.u32 1, %s988_s27  }
  0xd0   : > { %s403_s11 = scalar_lea.sflag [#allocation3], %s402_s21 }
  0xd1   : > { %665 = dma.done.wait (%p512_p0), %s403_s11, 96  }
  0xd2   : > { %667 = vsyncadd (%p512_p0), %s403_s11, 4294967200  ;;  %s17_s14 = sadd.s32 1, %s690_s14   ;;  %s990_s25 = sld [smem:[#allocation12_spill]] }
  0xd3   : > { %p14_p1 = scmp.ge.s32.totalorder %s17_s14, 4   ;;  %s991_s11 = sld [smem:[#allocation16_spill]] }
  0xd4   : > { %s992_s12 = sld [smem:[#allocation13_spill]]  ;;  %s994_s9 = smov %s674_s10 }
  0xd5   : > { %s993_s13 = sld [smem:[#allocation14_spill]]  ;;  %16 = sbr.rel (!%p14_p1) target bundleno = 9 (0x9), region = 72 }
  0xd8   : > { %s995_s10 = smov %s990_s25 }
  0xda   :  { %408 = vsyncpa [#allocation3], 1 }
  0xdb   :  { %410 = vsyncpa [#allocation3 + $0x1], 1 }
  0xdc   :  { %411 = vsyncpa [#allocation4], 1 }
  0xdd   :  { %413 = vsyncpa [#allocation4 + $0x1], 1 }
  0xde   :  { %414 = vsyncpa [#allocation5], 1 }
  0xdf   :  { %416 = vsyncpa [#allocation5 + $0x1], 1 }

</bundles_post_ra>
